<compile_context>
chip_gen: v7x
topology: tpu7x:2x2x1
jax: 0.10.0
libtpu: 0.0.40
codegen_flags: <defaults>
</compile_context>

<pallas_src>
import math

import jax
import jax.numpy as jnp
from jax.experimental import pallas as pl
from jax.experimental.pallas import tpu as pltpu

LANE = 128              # vreg lane width (fast axis)
MAX_FLAT_LANES = 2048   # cap on the lcm-based lane width


def _cdiv(a, b):
    return -(-a // b)


def _round_up(x, m):
    return _cdiv(x, m) * m


def _min_sublane(dtype):
    # Min-tile rows: (8,128) for 32-bit, (16,128) for 16-bit, (32,128) for 8-bit.
    return {4: 8, 2: 16, 1: 32}.get(jnp.dtype(dtype).itemsize, 8)


# ---------------------------------------------------------------------------
# Layout helpers: make the last axis lane-dense
# ---------------------------------------------------------------------------
def _to_lane_dense(x, fill):
    """Re-layout a (N, C) feature tensor so the last axis is lane-dense.

    Returns (x2d, fill_row, meta):
      x2d:      (R, L) with L % 128 == 0 (rows are NOT padded)
      fill_row: (1, L) per-lane fill values (fill tiled L // C times)
      meta:     info needed to undo the re-layout
    """
    n, c = x.shape
    fill = fill.astype(x.dtype)
    lcm = (LANE * c) // math.gcd(LANE, c)
    if lcm <= MAX_FLAT_LANES:
        # Flat row-major view: each L-lane row holds L//C whole column cycles,
        # so one tiled (1, L) fill row is valid for every row.
        lw = lcm
        total = n * c
        fill_row = jnp.tile(fill, lw // c).reshape(1, lw)
        if total % lw == 0:
            x2d = x.reshape(total // lw, lw)          # metadata-only reshape
            meta = ("flat", n, c, False)
        else:
            r = _cdiv(total, lw)
            flat = jnp.pad(x.reshape(-1), (0, r * lw - total))
            x2d = flat.reshape(r, lw)
            meta = ("flat", n, c, True)
        return x2d, fill_row, meta
    # Rare fallback (lcm unreasonably large): pad columns up to a lane multiple.
    cp = _round_up(c, LANE)
    x2d = jnp.pad(x, ((0, 0), (0, cp - c)))
    fill_row = jnp.pad(fill, (0, cp - c)).reshape(1, cp)
    return x2d, fill_row, ("pad", n, c, True)


def _from_lane_dense(y2d, meta):
    layout, n, c, padded = meta
    if layout == "flat":
        if not padded:
            return y2d.reshape(n, c)                  # metadata-only reshape
        return y2d.reshape(-1)[: n * c].reshape(n, c)
    return y2d[:, :c]


# ---------------------------------------------------------------------------
# Pallas kernel (fused numerical + categorical fill)
# ---------------------------------------------------------------------------
def _make_fill_kernel(kinds):
    """Build a fused kernel body for the given stream kinds ('num'/'cat')."""
    n = len(kinds)

    def kernel(*refs):
        x_refs, f_refs, o_refs = refs[:n], refs[n:2 * n], refs[2 * n:]
        for kind, x_ref, f_ref, o_ref in zip(kinds, x_refs, f_refs, o_refs):
            x = x_ref[...]            # (BN, L) block
            fill = f_ref[...]         # (1,  L), broadcasts over rows
            if kind == "num":
                # fill row was pre-sanitized (NaN stat -> 0); the clip
                # reproduces torch.nan_to_num's default +/-inf clamping.
                y = jnp.where(jnp.isnan(x), fill, x)
                info = jnp.finfo(y.dtype)
                o_ref[...] = jnp.clip(y, info.min, info.max)
            else:
                o_ref[...] = jnp.where(x == -1, fill, x)

    return kernel


def _row_map(i):
    return (i, 0)


def _clamped_row_map(nblocks):
    def imap(i):
        return (jnp.minimum(i, nblocks - 1), 0)
    return imap


def _fill_map(i):
    return (0, 0)


def _plan_grid(streams, target_step_bytes):
    """Pick grid length + per-stream block rows from the combined step bytes."""
    rows = [x.shape[0] for _, x, _, _ in streams]
    subs = [_min_sublane(x.dtype) for _, x, _, _ in streams]
    total_in = sum(x.shape[0] * x.shape[1] * x.dtype.itemsize
                   for _, x, _, _ in streams)
    g = max(1, _cdiv(total_in, max(1, int(target_step_bytes))))

    def block_rows(g_):
        return [max(s, _round_up(_cdiv(r, g_), s)) for r, s in zip(rows, subs)]

    bns = block_rows(g)
    g = max(_cdiv(r, bn) for r, bn in zip(rows, bns))
    if g == 1 and any(r > s for r, s in zip(rows, subs)):
        # Keep >= 2 grid steps when possible so the "parallel" row axis can
        # shard across v7x's two TensorCores.
        bns = block_rows(2)
        g = max(_cdiv(r, bn) for r, bn in zip(rows, bns))
    return g, bns


def _fused_fill(streams, *, target_step_bytes, vmem_limit_bytes=None):
    """One pallas_call applying per-column fills to every stream.

    streams: list of (kind, x2d, fill_row, meta) from _to_lane_dense.
    Returns the filled lane-dense arrays (same order / shapes as x2d).
    """
    grid_len, bns = _plan_grid(streams, target_step_bytes)

    xs, fills, x_specs, f_specs, out_specs, out_shapes = [], [], [], [], [], []
    needs_clamp = False
    for (kind, x2d, fill_row, _), bn in zip(streams, bns):
        r, lw = x2d.shape
        nblocks = _cdiv(r, bn)
        if nblocks == grid_len:
            imap = _row_map
        else:
            # Fewer blocks than the shared grid: trailing steps re-visit the
            # last block (idempotent re-write of identical values).
            needs_clamp = True
            imap = _clamped_row_map(nblocks)
        xs.append(x2d)
        fills.append(fill_row)
        x_specs.append(pl.BlockSpec((bn, lw), imap))
        f_specs.append(pl.BlockSpec((1, lw), _fill_map))
        out_specs.append(pl.BlockSpec((bn, lw), imap))
        out_shapes.append(jax.ShapeDtypeStruct((r, lw), x2d.dtype))

    semantics = ("arbitrary",) if needs_clamp else ("parallel",)
    cp_kwargs = dict(dimension_semantics=semantics)
    if vmem_limit_bytes is not None:
        cp_kwargs["vmem_limit_bytes"] = int(vmem_limit_bytes)

    kernel = _make_fill_kernel(tuple(kind for kind, _, _, _ in streams))
    outs = pl.pallas_call(
        kernel,
        out_shape=tuple(out_shapes),
        grid_spec=pltpu.PrefetchScalarGridSpec(
            num_scalar_prefetch=0,
            grid=(grid_len,),
            in_specs=x_specs + f_specs,
            out_specs=tuple(out_specs),
        ),
        compiler_params=pltpu.CompilerParams(**cp_kwargs),
    )(*xs, *fills)
    return list(outs)


# ---------------------------------------------------------------------------
# Per-generation block budgets
# ---------------------------------------------------------------------------
def _default_budgets():
    """Return (per-step input bytes, scoped-VMEM limit or None).

    VMEM use ~= 4x the per-step input bytes (input + output, double buffered).
    """
    kind = ""
    try:
        kind = jax.devices()[0].device_kind.lower()
    except Exception:
        pass
    vmem_phys = None
    try:
        vmem_phys = int(pltpu.get_tpu_info().vmem_capacity_bytes)
    except Exception:
        pass
    if vmem_phys is None or vmem_phys <= 0:
        vmem_phys = 128 << 20
    if "v5 lite" in kind or "v5e" in kind or "v5lite" in kind:
        # v5e: 16 MiB default scoped VMEM, 0.82 TB/s HBM -> ~1 MiB/stream blocks
        # already keep the ~0.35 us per-step overhead under ~10%.
        return 2 << 20, None
    # v6e (128 MiB phys) / v7x (64 MiB phys) / unknown: multi-MiB blocks with an
    # explicit scoped-VMEM limit (~32 MiB used, limit capped at 48 MiB or 3/4
    # of physical VMEM, whichever is smaller).
    limit = min(48 << 20, (vmem_phys * 3) // 4)
    return 8 << 20, limit


# ---------------------------------------------------------------------------
# JAX-side TableTransform (glue mirroring the torch module semantics)
# ---------------------------------------------------------------------------
class TableTransformJAX:
    """JAX/Pallas port of TableTransform's forward pass.

    feat_dict: {"numerical": float (N, C_num), "categorical": int (N, C_cat)}
    stats:     {"numerical": per-column MEAN (C_num,),
                "categorical": per-column MOST_FREQUENT (C_cat,)}
    na_mode is fixed to the torch defaults (MEAN / MOST_FREQUENT); `transforms`
    are callables applied after nan_forward, mirroring TableTransform.forward.
    """

    def __init__(self, out_dim=None, transforms=None,
                 target_step_bytes=None, vmem_limit_bytes=None):
        self.out_dim = out_dim
        self.transforms = list(transforms) if transforms is not None else []
        auto_step, auto_limit = _default_budgets()
        self.target_step_bytes = (auto_step if target_step_bytes is None
                                  else int(target_step_bytes))
        self.vmem_limit_bytes = (auto_limit if vmem_limit_bytes is None
                                 else int(vmem_limit_bytes))

    def nan_forward(self, feat_dict, stats):
        streams, keys = [], []
        for key, kind in (("numerical", "num"), ("categorical", "cat")):
            if key not in feat_dict:
                continue
            x = feat_dict[key]
            fill = stats[key].astype(x.dtype)
            if kind == "num":
                # Hoisted sanitization: a NaN column stat behaves as fill 0
                # (matches fill-then-nan_to_num(nan=0)).
                fill = jnp.where(jnp.isnan(fill), jnp.zeros_like(fill), fill)
            x2d, fill_row, meta = _to_lane_dense(x, fill)
            streams.append((kind, x2d, fill_row, meta))
            keys.append(key)
        if not streams:
            return dict(feat_dict)
        outs = _fused_fill(streams,
                           target_step_bytes=self.target_step_bytes,
                           vmem_limit_bytes=self.vmem_limit_bytes)
        result = dict(feat_dict)
        for key, (_, _, _, meta), y in zip(keys, streams, outs):
            result[key] = _from_lane_dense(y, meta)
        return result

    def __call__(self, feat_dict, stats):
        data = self.nan_forward(feat_dict, stats)
        for transform in self.transforms:
            data = transform(data)
        return data


# ---------------------------------------------------------------------------
# Demo / correctness check
# ---------------------------------------------------------------------------
if __name__ == "__main__":
    key = jax.random.PRNGKey(0)
    keys = jax.random.split(key, 10)

    # ---- Case 1: fused num + cat, copy-free flat layout, multi-step grid ----
    N, C_NUM, C_CAT = 128, 32, 32      # N*C % 128 == 0 -> pure-reshape layout

    x_num = jax.random.normal(keys[0], (N, C_NUM), dtype=jnp.float32)
    nan_mask = jax.random.bernoulli(keys[1], 0.2, (N, C_NUM))
    x_num = jnp.where(nan_mask, jnp.nan, x_num)
    x_num = x_num.at[0, 5].set(jnp.inf)       # +inf -> finfo.max
    x_num = x_num.at[1, 6].set(-jnp.inf)      # -inf -> finfo.min
    x_num = x_num.at[:, 3].set(jnp.nan)       # all-NaN column (NaN mean stat)

    x_cat = jax.random.randint(keys[2], (N, C_CAT), 0, 7, dtype=jnp.int32)
    neg_mask = jax.random.bernoulli(keys[3], 0.2, (N, C_CAT))
    x_cat = jnp.where(neg_mask, jnp.int32(-1), x_cat)

    col_means = jnp.nanmean(x_num, axis=0).astype(jnp.float32)        # MEAN
    col_most_frequent = (jnp.arange(C_CAT, dtype=jnp.int32) % 5)      # MOST_FREQUENT

    feat_dict = {"numerical": x_num, "categorical": x_cat}
    stats = {"numerical": col_means, "categorical": col_most_frequent}

    # Tiny per-step budget so even this small demo runs a multi-step pipeline.
    module = TableTransformJAX(out_dim=None, transforms=[lambda d: d],
                               target_step_bytes=8 * 128 * 4)
    out = module(feat_dict, stats)
    out = jax.tree_util.tree_map(jax.block_until_ready, out)

    # Pure-JAX reference for nan_forward semantics.
    ref_num = jnp.where(jnp.isnan(x_num), col_means[None, :], x_num)
    ref_num = jnp.nan_to_num(ref_num, nan=0.0)
    ref_cat = jnp.where(x_cat == -1, col_most_frequent[None, :], x_cat)

    assert out["numerical"].shape == x_num.shape
    assert out["categorical"].shape == x_cat.shape
    assert jnp.allclose(out["numerical"], ref_num, atol=1e-6)
    assert jnp.array_equal(out["categorical"], ref_cat)
    assert not bool(jnp.isnan(out["numerical"]).any())
    assert not bool((out["categorical"] == -1).any())

    # ---- Case 2: numerical-only, C=20 (lcm(20,128)=640 lane-dense layout) ----
    N2, C2 = 9, 20
    x2 = jax.random.normal(keys[4], (N2, C2), dtype=jnp.float32)
    nan2 = jax.random.bernoulli(keys[5], 0.3, (N2, C2))
    x2 = jnp.where(nan2, jnp.nan, x2)
    means2 = jnp.nan_to_num(jnp.nanmean(x2, axis=0)).astype(jnp.float32)

    out2 = module({"numerical": x2}, {"numerical": means2})
    out2 = jax.tree_util.tree_map(jax.block_until_ready, out2)
    ref2 = jnp.nan_to_num(jnp.where(jnp.isnan(x2), means2[None, :], x2), nan=0.0)
    assert out2["numerical"].shape == x2.shape
    assert jnp.allclose(out2["numerical"], ref2, atol=1e-6)

    # ---- Case 3: mismatched stream sizes (exercises clamped index maps) ----
    N3, C3_NUM, C3_CAT = 64, 32, 8
    x3n = jax.random.normal(keys[6], (N3, C3_NUM), dtype=jnp.float32)
    x3n = jnp.where(jax.random.bernoulli(keys[7], 0.25, x3n.shape), jnp.nan, x3n)
    x3c = jax.random.randint(keys[8], (N3, C3_CAT), 0, 9, dtype=jnp.int32)
    x3c = jnp.where(jax.random.bernoulli(keys[9], 0.25, x3c.shape),
                    jnp.int32(-1), x3c)
    means3 = jnp.nan_to_num(jnp.nanmean(x3n, axis=0)).astype(jnp.float32)
    mf3 = (jnp.arange(C3_CAT, dtype=jnp.int32) % 3)

    out3 = module({"numerical": x3n, "categorical": x3c},
                  {"numerical": means3, "categorical": mf3})
    out3 = jax.tree_util.tree_map(jax.block_until_ready, out3)
    ref3n = jnp.nan_to_num(jnp.where(jnp.isnan(x3n), means3[None, :], x3n),
                           nan=0.0)
    ref3c = jnp.where(x3c == -1, mf3[None, :], x3c)
    assert out3["numerical"].shape == x3n.shape
    assert out3["categorical"].shape == x3c.shape
    assert jnp.allclose(out3["numerical"], ref3n, atol=1e-6)
    assert jnp.array_equal(out3["categorical"], ref3c)

    print("KERNEL_OK")
</pallas_src>

<mosaic_0001>
module attributes {stable_mosaic.version = 11 : i64} {
  func.func @kernel(%arg0: i32, %arg1: memref<8x128xf32, #tpu.memory_space<vmem>>, %arg2: memref<8x128xi32, #tpu.memory_space<vmem>>, %arg3: memref<1x128xf32, #tpu.memory_space<vmem>>, %arg4: memref<1x128xi32, #tpu.memory_space<vmem>>, %arg5: memref<8x128xf32, #tpu.memory_space<vmem>>, %arg6: memref<8x128xi32, #tpu.memory_space<vmem>>) attributes {dimension_semantics = [#tpu.dimension_semantics<parallel>], iteration_bounds = array<i64: 4>, scalar_prefetch = 0 : i64, scratch_operands = 0 : i64, tpu.core_type = #tpu.core_type<tc>, window_params = [{transform_indices = @transform_0, window_bounds = array<i64: 8, 128>}, {transform_indices = @transform_1, window_bounds = array<i64: 8, 128>}, {pipeline_mode = #tpu.pipeline_mode<synchronous>, transform_indices = @transform_2, window_bounds = array<i64: 1, 128>}, {pipeline_mode = #tpu.pipeline_mode<synchronous>, transform_indices = @transform_3, window_bounds = array<i64: 1, 128>}, {transform_indices = @transform_4, window_bounds = array<i64: 8, 128>}, {transform_indices = @transform_5, window_bounds = array<i64: 8, 128>}]} {
    %c0 = arith.constant 0 : index
    %c0_0 = arith.constant 0 : index
    %0 = vector.load %arg1[%c0, %c0_0] : memref<8x128xf32, #tpu.memory_space<vmem>>, vector<8x128xf32>
    %c0_1 = arith.constant 0 : index
    %c0_2 = arith.constant 0 : index
    %1 = vector.load %arg3[%c0_1, %c0_2] : memref<1x128xf32, #tpu.memory_space<vmem>>, vector<1x128xf32>
    %2 = arith.cmpf one, %0, %0 : vector<8x128xf32>
    %3 = vector.shape_cast %1 : vector<1x128xf32> to vector<1x128xf32>
    %4 = vector.broadcast %3 : vector<1x128xf32> to vector<8x128xf32>
    %5 = arith.select %2, %4, %0 : vector<8x128xi1>, vector<8x128xf32>
    %cst = arith.constant -3.40282347E+38 : f32
    %cst_3 = arith.constant 3.40282347E+38 : f32
    %6 = vector.broadcast %cst : f32 to vector<8x128xf32>
    %7 = arith.maximumf %6, %5 : vector<8x128xf32>
    %8 = vector.broadcast %cst_3 : f32 to vector<8x128xf32>
    %9 = arith.minimumf %8, %7 : vector<8x128xf32>
    %c0_4 = arith.constant 0 : index
    %c0_5 = arith.constant 0 : index
    %10 = vector.load %arg5[%c0_4, %c0_5] : memref<8x128xf32, #tpu.memory_space<vmem>>, vector<8x128xf32>
    tpu.vector_store %arg5[%c0_4, %c0_5], %9 {strides = array<i32>} : memref<8x128xf32, #tpu.memory_space<vmem>>, vector<8x128xf32>,
    %c0_6 = arith.constant 0 : index
    %c0_7 = arith.constant 0 : index
    %11 = vector.load %arg2[%c0_6, %c0_7] : memref<8x128xi32, #tpu.memory_space<vmem>>, vector<8x128xi32>
    %c0_8 = arith.constant 0 : index
    %c0_9 = arith.constant 0 : index
    %12 = vector.load %arg4[%c0_8, %c0_9] : memref<1x128xi32, #tpu.memory_space<vmem>>, vector<1x128xi32>
    %c-1_i32 = arith.constant -1 : i32
    %13 = vector.broadcast %c-1_i32 : i32 to vector<8x128xi32>
    %14 = arith.cmpi eq, %11, %13 : vector<8x128xi32>
    %15 = vector.shape_cast %12 : vector<1x128xi32> to vector<1x128xi32>
    %16 = vector.broadcast %15 : vector<1x128xi32> to vector<8x128xi32>
    %17 = arith.select %14, %16, %11 : vector<8x128xi1>, vector<8x128xi32>
    %c0_10 = arith.constant 0 : index
    %c0_11 = arith.constant 0 : index
    %18 = vector.load %arg6[%c0_10, %c0_11] : memref<8x128xi32, #tpu.memory_space<vmem>>, vector<8x128xi32>
    tpu.vector_store %arg6[%c0_10, %c0_11], %17 {strides = array<i32>} : memref<8x128xi32, #tpu.memory_space<vmem>>, vector<8x128xi32>,
    return
  }
  func.func @transform_0(%arg0: i32) -> (i32, i32) {
    %c0_i32 = arith.constant 0 : i32
    %c0_i32_0 = arith.constant 0 : i32
    return %arg0, %c0_i32 : i32, i32
  }
  func.func @transform_1(%arg0: i32) -> (i32, i32) {
    %c0_i32 = arith.constant 0 : i32
    %c0_i32_0 = arith.constant 0 : i32
    return %arg0, %c0_i32 : i32, i32
  }
  func.func @transform_2(%arg0: i32) -> (i32, i32) {
    %c0_i32 = arith.constant 0 : i32
    %c0_i32_0 = arith.constant 0 : i32
    %c0_i32_1 = arith.constant 0 : i32
    return %c0_i32, %c0_i32_0 : i32, i32
  }
  func.func @transform_3(%arg0: i32) -> (i32, i32) {
    %c0_i32 = arith.constant 0 : i32
    %c0_i32_0 = arith.constant 0 : i32
    %c0_i32_1 = arith.constant 0 : i32
    return %c0_i32, %c0_i32_0 : i32, i32
  }
  func.func @transform_4(%arg0: i32) -> (i32, i32) {
    %c0_i32 = arith.constant 0 : i32
    %c0_i32_0 = arith.constant 0 : i32
    return %arg0, %c0_i32 : i32, i32
  }
  func.func @transform_5(%arg0: i32) -> (i32, i32) {
    %c0_i32 = arith.constant 0 : i32
    %c0_i32_0 = arith.constant 0 : i32
    return %arg0, %c0_i32 : i32, i32
  }
}

</mosaic_0001>

<bundles_post_ra>
// kernel: tpu_custom_call.1
= control target key start
LH: loop header
LB: loop body
LE: loop exit
PB: predicated region body
PF: predicated region fallthrough
CT: control target
= control target key end

     0   :  { %11 = vsyncpa [#allocation3], 0  ;;  %s994_s0 = inlined_call_operand.hbm [shape: f32[32,128], index: 0, kind: input, shape index: {}]   ;;  %s995_s1 = inlined_call_operand.hbm [shape: s32[32,128], index: 1, kind: input, shape index: {}]   ;;  %s996_s2 = inlined_call_operand.vmem [shape: f32[1,128], index: 2, kind: input, shape index: {}]   ;;  %s997_s3 = inlined_call_operand.vmem [shape: s32[1,128], index: 3, kind: input, shape index: {}]   ;;  %s998_s4 = inlined_call_operand.hbm [shape: f32[32,128], index: 4, kind: output, shape index: {0}]   ;;  %s999_s5 = inlined_call_operand.hbm [shape: s32[32,128], index: 5, kind: output, shape index: {1}]  }
   0x1   :  { %13 = vsyncpa [#allocation3 + $0x1], 0 }
   0x2   :  { %14 = vsyncpa [#allocation6], 0 }
   0x3   :  { %16 = vsyncpa [#allocation6 + $0x1], 0 }
   0x4   :  { %17 = vsyncpa [#allocation4], 0 }
   0x5   :  { %19 = vsyncpa [#allocation4 + $0x1], 0 }
   0x6   :  { %20 = vsyncpa [#allocation9], 0 }
   0x7   :  { %22 = vsyncpa [#allocation9 + $0x1], 0  ;;  %s742_s18 = smov 0   ;;  %s744_s19 = smov 0  }
   0x8   :  { %s746_s20 = smov 0   ;;  %s748_s21 = smov 0  }
   0x9 LB: > { %s763_s22 = sadd.s32 4294967295, %s706_s21   ;;  %s467_s23 = sadd.s32 4294967294, %s706_s21   ;;  %s706_s21 = sphi %s748_s21, %s1017_s21   ;;  %s702_s20 = sphi %s746_s20, %s1016_s20   ;;  %s698_s19 = sphi %s744_s19, %s1015_s19   ;;  %s694_s18 = sphi %s742_s18, %s1014_s18  }
   0xa   : > { %s767_s24 = sadd.s32 1, %s706_s21   ;;  %s35_s25 = sadd.s32 1, %s702_s20 }
   0xb   : > { %s32_s26 = ssub.s32 %s706_s21, %s767_s24  ;;  %p42_p0 = scmp.ne.s32.totalorder %s702_s20, %s698_s19 }
   0xc   : > { %p33_p1 = scmp.eq.s32.totalorder %s32_s26, 0  ;;  %p43_p2 = scmp.eq.s32.totalorder %s706_s21, 0 }
   0xd   : > { %p48_p3 = scmp.ne.s32.totalorder %s698_s19, %s694_s18  ;;  %p49_p4 = scmp.eq.s32.totalorder %s763_s22, 0 }
   0xe   : > { %s779_s27 = scalar_select %p33_p1, %s702_s20, %s35_s25  }
   0xf   : > { %p781_p5 = por %p43_p2, %p42_p0  ;;  %p785_p6 = por %p49_p4, %p48_p3 }
  0x10   : > { %p140_p7 = scmp.eq.s32.totalorder %s763_s22, 3  ;;  %p146_p8 = scmp.eq.s32.totalorder %s467_s23, 3 }
  0x11   : > { %s1003_s29 = scalar_select %p785_p6, 1, 0 }
  0x12   : > { %p510_p9 = scmp.lt.s32.totalorder %s706_s21, 4  ;;  %p791_p10 = por %p140_p7, %p42_p0 }
  0x13   : > { %p795_p11 = por %p146_p8, %p48_p3  ;;  %s800_s7 = sand.u32 1, %s702_s20  }
  0x14   : > { %s1004_s30 = scalar_select %p791_p10, 1, 0 }
  0x15   : > { %s1005_s6 = scalar_select %p795_p11, 1, 0 }
  0x16   : > { %s471_s8 = sshll.u32 %s706_s21, 7  ;;  %s470_s9 = sshll.u32 %s800_s7, 3 }
  0x17   : > { %s809_s12 = scalar_lea.hbm %s994_s0, %s471_s8  ;;  %s202_s13 = scalar_lea.vmem [#allocation2], %s470_s9 }
  0x18   : > { %s209_s14 = sshll.u32 %s202_s13, 4  ;;  %p815_p12 = pnand %p510_p9, %p781_p5  ;;  %s819_s14 = int_to_ptr.vmem [resolvable:$true] %s209_s14 }
  0x19   : > { %s199_s16 = scalar_lea.sflag [#allocation3], %s800_s7  ;;  %s544_s17 = scalar_lea.hbm %s809_s12, 128 }
  0x1a   : > { %p545_p1 = scmp.ne.s32.totalorder %s809_s12, %s544_s17  ;;  %p546_p2 = pneg %p815_p12 }
  0x1b   : > { %s549_s26 = scalar_lea.hbm %s994_s0, 512  ;;  %p550_p5 = scmp.lt.u32.totalorder %s809_s12, %s994_s0 }
  0x1c   : > { %p547_p3 = pnand %p546_p2, %p545_p1  ;;  %p551_p7 = scmp.lt.u32.totalorder %s549_s26, %s544_s17 }
  0x1d   : > { %p553_p9 = scmp.lt.u32.totalorder %s544_s17, %s809_s12 }
  0x1e   : > { %p548_p4 = pneg %p547_p3  ;;  %p552_p8 = por %p551_p7, %p550_p5 }
  0x20   : > { %p554_p13 = por %p553_p9, %p552_p8 }
  0x22   : > { %p555_p0 = pnand %p554_p13, %p548_p4 }
  0x24   : > { %558 = shalt.err (!%p555_p0)
}
  0x25   : > { %s559_s11 = scalar_lea.vmem %s819_s14, 128  ;;  %s708_s13 = smov [#allocation2]  }
  0x26   : > { %p560_p1 = scmp.ne.s32.totalorder %s819_s14, %s559_s11  ;;  %s564_s23 = sshll.u32 %s708_s13, 4  ;;  %s565_s23 = int_to_ptr.vmem [resolvable:$false] %s564_s23 }
  0x27   : > { %s566_s25 = scalar_lea.vmem %s565_s23, 256  ;;  %p567_p10 = scmp.lt.s32.totalorder %s819_s14, %s565_s23 }
  0x28   : > { %p562_p3 = pnand %p560_p1, %p546_p2  ;;  %p568_p5 = scmp.lt.s32.totalorder %s566_s25, %s559_s11 }
  0x2a   : > { %p563_p11 = pneg %p562_p3  ;;  %p569_p7 = por %p568_p5, %p567_p10 }
  0x2c   : > { %p570_p8 = pnand %p569_p7, %p563_p11 }
  0x2e   : > { %573 = shalt.err (!%p570_p8)
}
  0x2f   : > { %499 = dma.hbm_to_vmem [thread:$0]  (!%p815_p12), %s809_s12, 128, %s819_s14, %s199_s16  }
  0x30   : > { %p1007_p13 = scmp.lt.s32.totalorder %s706_s21, 5  ;;  %p1008_p0 = scmp.ge.s32.totalorder %s706_s21, 1 }
  0x31   : > { %s862_s10 = scalar_lea.hbm %s995_s1, %s471_s8  ;;  %s220_s11 = scalar_lea.vmem [#allocation5], %s470_s9 }
  0x32   : > { %p853_p4 = pnand %p1008_p0, %p1007_p13  ;;  %s227_s13 = sshll.u32 %s220_s11, 4  ;;  %s228_s13 = int_to_ptr.vmem [resolvable:$true] %s227_s13 }
  0x33   : > { %s217_s12 = scalar_lea.sflag [#allocation6], %s800_s7  ;;  %s574_s14 = scalar_lea.hbm %s862_s10, 128 }
  0x34   : > { %s1009_s17 = scalar_select %p853_p4, 1, 0 }
  0x35   : > { %p575_p10 = scmp.ne.s32.totalorder %s862_s10, %s574_s14  ;;  %s579_s8 = scalar_lea.hbm %s995_s1, 512 }
  0x36   : > { %p580_p1 = scmp.lt.u32.totalorder %s862_s10, %s995_s1  ;;  %p581_p3 = scmp.lt.u32.totalorder %s579_s8, %s574_s14 }
  0x37   : > { %p577_p11 = pnand %p575_p10, %p546_p2  ;;  %p583_p7 = scmp.lt.u32.totalorder %s574_s14, %s862_s10 }
  0x38   : > { %p582_p5 = por %p581_p3, %p580_p1 }
  0x39   : > { %p578_p9 = pneg %p577_p11 }
  0x3a   : > { %p584_p8 = por %p583_p7, %p582_p5 }
  0x3c   : > { %p585_p13 = pnand %p584_p8, %p578_p9 }
  0x3e   : > { %588 = shalt.err (!%p585_p13)
}
  0x3f   : > { %s589_s7 = scalar_lea.vmem %s228_s13, 128  ;;  %s709_s9 = smov [#allocation5]  }
  0x40   : > { %p590_p0 = scmp.ne.s32.totalorder %s228_s13, %s589_s7  ;;  %s594_s28 = sshll.u32 %s709_s9, 4  ;;  %s595_s28 = int_to_ptr.vmem [resolvable:$false] %s594_s28 }
  0x41   : > { %s596_s11 = scalar_lea.vmem %s595_s28, 256  ;;  %p597_p6 = scmp.lt.s32.totalorder %s228_s13, %s595_s28 }
  0x42   : > { %p592_p10 = pnand %p590_p0, %p546_p2  ;;  %p598_p4 = scmp.lt.s32.totalorder %s596_s11, %s589_s7 }
  0x44   : > { %p593_p11 = pneg %p592_p10  ;;  %p599_p1 = por %p598_p4, %p597_p6 }
  0x46   : > { %p600_p3 = pnand %p599_p1, %p593_p11 }
  0x48   : > { %603 = shalt.err (!%p600_p3)
}
  0x49   : > { %502 = dma.hbm_to_vmem [thread:$0]  (!%p815_p12), %s862_s10, 128, %s228_s13, %s217_s12  }
  0x4a   : > { %p1010_p9 = scmp.ne.s32.totalorder %s1009_s17, 0 }
  0x4b   : > { %s889_s14 = sand.u32 (!%p1010_p9), 1, %s698_s19   ;;  %p1011_p6 = scmp.ne.s32.totalorder (!%p1010_p9), %s1003_s29, 0 }
  0x4c   : > { %236 = sbr.rel (%p1010_p9) target bundleno = 136 (0x88), region = 36  ;;  %s892_s16 = sshll.u32 (!%p1010_p9), %s889_s14, 3 }
  0x4d   : > { %s239_s23 = scalar_lea.sflag (!%p1010_p9), [#allocation3], %s889_s14  ;;  %s242_s8 = scalar_lea.vmem (!%p1010_p9), [#allocation2], %s892_s16 }
  0x53   : > { %677 = dma.done.wait (%p1011_p6), %s239_s23, 128  }
  0x54   : > { %679 = vsyncadd (%p1011_p6), %s239_s23, 4294967168  ;;  %s248_s15 = scalar_lea.sflag [#allocation6], %s889_s14  ;;  %s251_s17 = scalar_lea.vmem [#allocation5], %s892_s16 }
  0x55   : > { %681 = dma.done.wait (%p1011_p6), %s248_s15, 128  }
  0x56   : > { %683 = vsyncadd (%p1011_p6), %s248_s15, 4294967168  ;;  %s287_s10 = scalar_lea.vmem [#allocation8], %s892_s16  ;;  %s484_s12 = sshll.u32 %s763_s22, 7  ;;  %v288_v0 = vld [vmem:[%s242_s8] sm:$0xff]  ;;  %v301_v2 = vld [vmem:[%s251_s17] sm:$0xff] }
  0x57   : > { %s342_s13 = sshll.u32 %s287_s10, 4  ;;  %s280_s25 = scalar_lea.vmem [#allocation7], %s892_s16  ;;  %v479_v1 = vld [vmem:[%s996_s2] ss:$0 sm:$0xff]  ;;  %vm290_vm0 = vcmp.ne.f32.partialorder %v288_v0, %v288_v0  ;;  %vm303_vm1 = vcmp.eq.s32.totalorder %v301_v2, 4294967295  ;;  %s914_s13 = int_to_ptr.vmem [resolvable:$true] %s342_s13 }
  0x58   : > { %s329_s26 = sshll.u32 %s280_s25, 4  ;;  %v481_v3 = vld [vmem:[%s997_s3] ss:$0 sm:$0xff]  ;;  %s922_s23 = scalar_lea.hbm %s999_s5, %s484_s12  ;;  %v297_v4 = vsel %vm290_vm0, %v479_v1, %v288_v0  ;;  %s924_s26 = int_to_ptr.vmem [resolvable:$true] %s329_s26 }
  0x59   : > { %v308_v5 = vsel %vm303_vm1, %v481_v3, %v301_v2  ;;  %v480_v6 = vclamps-f32 %v297_v4, 3.4028235e+38  ;;  %s929_s17 = scalar_lea.hbm %s998_s4, %s484_s12  ;;  %s316_s7 = scalar_lea.sflag [#allocation9], %s889_s14 }
  0x5a   : > { %309 = vst [vmem:[%s287_s10] sm:$0xff] %v308_v5  ;;  %s604_s9 = scalar_lea.vmem %s914_s13, 128  ;;  %p1012_p2 = scmp.ne.s32.totalorder %s1004_s30, 0 }
  0x5b   : > { %p605_p12 = scmp.ne.s32.totalorder %s914_s13, %s604_s9  ;;  %s710_s29 = smov [#allocation8]  }
  0x5c   : > { %s608_s28 = sshll.u32 %s710_s29, 4  ;;  %s609_s28 = int_to_ptr.vmem [resolvable:$false] %s608_s28 }
  0x5d   : > { %p606_p4 = pnand %p605_p12, %p1012_p2  ;;  %s610_s22 = scalar_lea.vmem %s609_s28, 256 }
  0x5e   : > { %p611_p7 = scmp.lt.s32.totalorder %s914_s13, %s609_s28  ;;  %p612_p8 = scmp.lt.s32.totalorder %s610_s22, %s604_s9 }
  0x5f   : > { %p607_p5 = pneg %p606_p4 }
  0x60   : > { %p613_p13 = por %p612_p8, %p611_p7 }
  0x62   : > { %p614_p0 = pnand %p613_p13, %p607_p5 }
  0x64   : > { %617 = shalt.err (!%p614_p0)
}
  0x65   : > { %s618_s10 = scalar_lea.hbm %s922_s23, 128  ;;  %s622_s8 = scalar_lea.hbm %s999_s5, 512 }
  0x66   : > { %p619_p10 = scmp.ne.s32.totalorder %s922_s23, %s618_s10  ;;  %p623_p3 = scmp.lt.u32.totalorder %s922_s23, %s999_s5 }
  0x67   : > { %p624_p9 = scmp.lt.u32.totalorder %s622_s8, %s618_s10  ;;  %p626_p12 = scmp.lt.u32.totalorder %s618_s10, %s922_s23 }
  0x68   : > { %p620_p11 = pnand %p619_p10, %p1012_p2 }
  0x69   : > { %p625_p6 = por %p624_p9, %p623_p3 }
  0x6a   : > { %p621_p1 = pneg %p620_p11 }
  0x6b   : > { %p627_p4 = por %p626_p12, %p625_p6 }
  0x6d   : > { %p628_p5 = pnand %p627_p4, %p621_p1 }
  0x6f   : > { %631 = shalt.err (!%p628_p5)
}
  0x70   : > { %493 = dma.vmem_to_hbm [thread:$0]  (%p1012_p2), %s914_s13, 128, %s922_s23, %s316_s7   ;;  %300 = vst [vmem:[%s280_s25] sm:$0xff] %v480_v6 }
  0x71   : > { %s311_s9 = scalar_lea.sflag [#allocation4], %s889_s14  ;;  %s632_s28 = scalar_lea.vmem %s924_s26, 128 }
  0x72   : > { %p633_p7 = scmp.ne.s32.totalorder %s924_s26, %s632_s28  ;;  %s711_s22 = smov [#allocation7]  }
  0x73   : > { %s636_s10 = sshll.u32 %s711_s22, 4  ;;  %s637_s10 = int_to_ptr.vmem [resolvable:$false] %s636_s10 }
  0x74   : > { %p634_p8 = pnand %p633_p7, %p1012_p2  ;;  %s638_s12 = scalar_lea.vmem %s637_s10, 256 }
  0x75   : > { %p639_p0 = scmp.lt.s32.totalorder %s924_s26, %s637_s10  ;;  %p640_p10 = scmp.lt.s32.totalorder %s638_s12, %s632_s28 }
  0x76   : > { %p635_p13 = pneg %p634_p8 }
  0x77   : > { %p641_p11 = por %p640_p10, %p639_p0 }
  0x79   : > { %p642_p1 = pnand %p641_p11, %p635_p13 }
  0x7b   : > { %645 = shalt.err (!%p642_p1)
}
  0x7c   : > { %s646_s14 = scalar_lea.hbm %s929_s17, 128  ;;  %s650_s25 = scalar_lea.hbm %s998_s4, 512 }
  0x7d   : > { %p647_p3 = scmp.ne.s32.totalorder %s929_s17, %s646_s14  ;;  %p651_p12 = scmp.lt.u32.totalorder %s929_s17, %s998_s4 }
  0x7e   : > { %p652_p4 = scmp.lt.u32.totalorder %s650_s25, %s646_s14  ;;  %p654_p7 = scmp.lt.u32.totalorder %s646_s14, %s929_s17 }
  0x7f   : > { %p648_p9 = pnand %p647_p3, %p1012_p2 }
  0x80   : > { %p653_p5 = por %p652_p4, %p651_p12 }
  0x81   : > { %p649_p6 = pneg %p648_p9 }
  0x82   : > { %p655_p8 = por %p654_p7, %p653_p5 }
  0x84   : > { %p656_p13 = pnand %p655_p8, %p649_p6 }
  0x86   : > { %659 = shalt.err (!%p656_p13)
}
  0x87   : > { %492 = dma.vmem_to_hbm [thread:$0]  (%p1012_p2), %s924_s26, 128, %s929_s17, %s311_s9  }
  0x88 PF: > { %p511_p0 = scmp.ge.s32.totalorder %s706_s21, 2  ;;  %s354_s11 = sand.u32 1, %s694_s18  }
  0x89   : > { %p1013_p10 = scmp.ne.s32.totalorder %s1005_s6, 0  ;;  %s355_s8 = scalar_lea.sflag [#allocation4], %s354_s11 }
  0x8b   : > { %p504_p11 = pnand %p511_p0, %p1013_p10 }
  0x8d   : > { %685 = dma.done.wait (!%p504_p11), %s355_s8, 128  }
  0x8e   : > { %687 = vsyncadd (!%p504_p11), %s355_s8, 4294967168  ;;  %s364_s15 = scalar_lea.sflag [#allocation9], %s354_s11 }
  0x8f   : > { %689 = dma.done.wait (!%p504_p11), %s364_s15, 128  }
  0x90   : > { %691 = vsyncadd (!%p504_p11), %s364_s15, 4294967168  ;;  %p25_p2 = scmp.ge.s32.totalorder %s767_s24, 6   ;;  %s1014_s18 = smov %s698_s19 }
  0x91   : > { %s1015_s19 = smov %s702_s20  ;;  %s1016_s20 = smov %s779_s27 }
  0x92   : > { %s1017_s21 = smov %s767_s24  ;;  %27 = sbr.rel (!%p25_p2) target bundleno = 9 (0x9), region = 111 }
  0x99   :  { %369 = vsyncpa [#allocation3], 1 }
  0x9a   :  { %371 = vsyncpa [#allocation3 + $0x1], 1 }
  0x9b   :  { %372 = vsyncpa [#allocation6], 1 }
  0x9c   :  { %374 = vsyncpa [#allocation6 + $0x1], 1 }
  0x9d   :  { %375 = vsyncpa [#allocation4], 1 }
  0x9e   :  { %377 = vsyncpa [#allocation4 + $0x1], 1 }
  0x9f   :  { %378 = vsyncpa [#allocation9], 1 }
  0xa0   :  { %380 = vsyncpa [#allocation9 + $0x1], 1 }

</bundles_post_ra>
